<compile_context>
chip_gen: v7x
topology: tpu7x:2x2x1
jax: 0.10.0
libtpu: 0.0.40
codegen_flags: <defaults>
</compile_context>

<pallas_src>
import jax
import jax.numpy as jnp
from jax.experimental import pallas as pl
from jax.experimental.pallas import tpu as pltpu


def _round_up(x: int, m: int) -> int:
    return ((x + m - 1) // m) * m


def _vmem_gather_kernel(ids_ref, emb_ref, out_ref):
    """FAST PATH: table is VMEM-resident; gather rows with in-VMEM dynamic loads."""
    r = out_ref.shape[0]
    base = pl.program_id(0) * r

    @pl.loop(0, r)
    def _gather(row):
        rid = ids_ref[base + row]                        # SMEM scalar read
        out_ref[pl.ds(row, 1), :] = emb_ref[pl.ds(rid, 1), :]


def _dma_gather_kernel(ids_ref, emb_hbm, out_ref, sem):
    """SLOW PATH: table stays in HBM; row DMAs land directly in out_ref."""
    r = out_ref.shape[0]
    base = pl.program_id(0) * r

    # 1) Issue all R row DMAs (HBM table row -> out_ref row) before waiting on
    #    any of them, so R small transfers are in flight at once.  They all
    #    signal the same DMA semaphore.  All SMEM id reads happen here, before
    #    the wait (keeps sst->sld forwarding intact).
    @pl.loop(0, r)
    def _start(row):
        rid = ids_ref[base + row]          # clamped in the wrapper -> in range
        pltpu.make_async_copy(
            emb_hbm.at[pl.ds(rid, 1), :],
            out_ref.at[pl.ds(row, 1), :],
            sem,
        ).start()

    # 2) One bulk wait: the DMA semaphore counts bytes and the R row copies
    #    sum to exactly one (R, h_dim) tile, so a single descriptor sized like
    #    out_ref retires all of them (.wait() only uses dst size + sem).
    pltpu.make_async_copy(out_ref, out_ref, sem).wait()


def embedding_lookup(node_id: jax.Array, emb_table: jax.Array,
                     *, block_rows: int = 128,
                     vmem_table_budget_bytes: int = 4 * 1024 * 1024) -> jax.Array:
    """Pallas TPU equivalent of torch.nn.Embedding(num_nodes, h_dim)(node_id).

    node_id:   int (N,)
    emb_table: float (num_nodes, h_dim)
    returns:   float (N, h_dim)
    """
    n = node_id.shape[0]
    num_nodes, h_dim = emb_table.shape

    # Clamp ids so no data-dependent access can ever go out of bounds.
    ids = jnp.clip(node_id.astype(jnp.int32), 0, num_nodes - 1)

    # Tile height R: multiple of 8 sublanes, at most `block_rows`, covers n.
    r = min(_round_up(block_rows, 8), _round_up(n, 8))
    n_pad = _round_up(n, r)
    ids = jnp.pad(ids, (0, n_pad - n))   # padded ids gather row 0; sliced off
    num_tiles = n_pad // r

    table_bytes = num_nodes * h_dim * emb_table.dtype.itemsize
    use_vmem_table = table_bytes <= vmem_table_budget_bytes

    if use_vmem_table:
        # Whole table VMEM-resident; constant block index -> fetched once.
        in_spec = pl.BlockSpec((num_nodes, h_dim), lambda i, ids_smem: (0, 0))
        kernel = _vmem_gather_kernel
        scratch = []
    else:
        # Table stays in HBM; kernel gathers rows by manual DMA.
        in_spec = pl.BlockSpec(memory_space=pl.ANY)
        kernel = _dma_gather_kernel
        scratch = [pltpu.SemaphoreType.DMA]   # one shared DMA semaphore

    grid_spec = pltpu.PrefetchScalarGridSpec(
        num_scalar_prefetch=1,               # ids -> SMEM, readable in the body
        grid=(num_tiles,),
        in_specs=[in_spec],
        out_specs=pl.BlockSpec((r, h_dim), lambda i, ids_smem: (i, 0)),
        scratch_shapes=scratch,
    )

    out = pl.pallas_call(
        kernel,
        out_shape=jax.ShapeDtypeStruct((n_pad, h_dim), emb_table.dtype),
        grid_spec=grid_spec,
        compiler_params=pltpu.CompilerParams(
            dimension_semantics=("parallel",),
        ),
    )(ids, emb_table)

    return out[:n]


if __name__ == "__main__":
    # Small, deterministic synthetic setup consistent with EmbeddingLayer:
    #   num_nodes = 512 nodes, h_dim = 128 hidden size, N = 300 node ids.
    num_nodes = 512
    h_dim = 128
    n_ids = 300

    key = jax.random.PRNGKey(0)
    k_emb, k_ids = jax.random.split(key)

    # Deterministic "parameter" init (torch.nn.Embedding default: N(0, 1)).
    emb_table = jax.random.normal(k_emb, (num_nodes, h_dim), dtype=jnp.float32)

    # Node ids (possibly repeated), shaped (N, 1) then squeezed like the
    # PyTorch forward does.
    node_id = jax.random.randint(k_ids, (n_ids, 1), 0, num_nodes, dtype=jnp.int32)
    node_id = jnp.squeeze(node_id)

    ref = emb_table[node_id]   # plain-JAX reference gather

    # FAST PATH: table (256 KiB) fits the VMEM budget -> VMEM-resident gather.
    out_fast = jax.block_until_ready(embedding_lookup(node_id, emb_table))
    assert out_fast.shape == (n_ids, h_dim)
    assert jnp.allclose(out_fast, ref), "fast-path mismatch vs reference gather"

    # SLOW PATH (forced): manual HBM row-DMA gather straight into out_ref.
    out_slow = jax.block_until_ready(
        embedding_lookup(node_id, emb_table, vmem_table_budget_bytes=0))
    assert out_slow.shape == (n_ids, h_dim)
    assert jnp.allclose(out_slow, ref), "slow-path mismatch vs reference gather"

    print("KERNEL_OK")
</pallas_src>

<mosaic_0001>
module attributes {stable_mosaic.version = 11 : i64} {
  func.func @_vmem_gather_kernel(%arg0: i32, %arg1: memref<384xi32, #tpu.memory_space<smem>>, %arg2: memref<512x128xf32, #tpu.memory_space<vmem>>, %arg3: memref<128x128xf32, #tpu.memory_space<vmem>>) attributes {dimension_semantics = [#tpu.dimension_semantics<parallel>], iteration_bounds = array<i64: 3>, scalar_prefetch = 1 : i64, scratch_operands = 0 : i64, tpu.core_type = #tpu.core_type<tc>, window_params = [{pipeline_mode = #tpu.pipeline_mode<synchronous>, transform_indices = @transform_0, window_bounds = array<i64: 512, 128>}, {transform_indices = @transform_1, window_bounds = array<i64: 128, 128>}]} {
    %c128_i32 = arith.constant 128 : i32
    %0 = arith.muli %arg0, %c128_i32 : i32
    %c0_i32 = arith.constant 0 : i32
    %c128_i32_0 = arith.constant 128 : i32
    %1 = arith.addi %c0_i32, %c128_i32_0 : i32
    %c1_i32 = arith.constant 1 : i32
    scf.for %arg4 = %c0_i32 to %1 step %c1_i32  : i32 {
      %c1_i32_2 = arith.constant 1 : i32
      %2 = arith.muli %arg4, %c1_i32_2 : i32
      %c0_i32_3 = arith.constant 0 : i32
      %3 = arith.addi %c0_i32_3, %2 : i32
      %4 = arith.addi %0, %3 : i32
      %5 = arith.index_cast %4 : i32 to index
      %6 = memref.load %arg1[%5] : memref<384xi32, #tpu.memory_space<smem>>
      %7 = arith.index_cast %6 : i32 to index
      %c0 = arith.constant 0 : index
      %8 = vector.load %arg2[%7, %c0] : memref<512x128xf32, #tpu.memory_space<vmem>>, vector<1x128xf32>
      %9 = arith.index_cast %3 : i32 to index
      %c0_4 = arith.constant 0 : index
      %10 = vector.load %arg3[%9, %c0_4] : memref<128x128xf32, #tpu.memory_space<vmem>>, vector<1x128xf32>
      tpu.vector_store %arg3[%9, %c0_4], %8 {strides = array<i32>} : memref<128x128xf32, #tpu.memory_space<vmem>>, vector<1x128xf32>,
    }
    %c128_i32_1 = arith.constant 128 : i32
    return
  }
  func.func @transform_0(%arg0: i32, %arg1: memref<384xi32, #tpu.memory_space<smem>>) -> (i32, i32) {
    %c0_i32 = arith.constant 0 : i32
    %c0_i32_0 = arith.constant 0 : i32
    %c0_i32_1 = arith.constant 0 : i32
    return %c0_i32, %c0_i32_0 : i32, i32
  }
  func.func @transform_1(%arg0: i32, %arg1: memref<384xi32, #tpu.memory_space<smem>>) -> (i32, i32) {
    %c0_i32 = arith.constant 0 : i32
    %c0_i32_0 = arith.constant 0 : i32
    return %arg0, %c0_i32 : i32, i32
  }
}

</mosaic_0001>

<bundles_post_ra>
// kernel: tpu_custom_call.1
= control target key start
LH: loop header
LB: loop body
LE: loop exit
PB: predicated region body
PF: predicated region fallthrough
CT: control target
= control target key end

     0   :  { %s575_s0 = inlined_call_operand.hbm [shape: s32[384], index: 0, kind: input, shape index: {}]   ;;  %s576_s1 = inlined_call_operand.hbm [shape: f32[512,128], index: 1, kind: input, shape index: {}]   ;;  %s577_s2 = inlined_call_operand.hbm [shape: f32[384,128], index: 2, kind: output, shape index: {}]  }
   0x1   :  { %s288_s11 = scalar_lea.hbm %s575_s0, 48  ;;  %s290_s16 = scalar_lea.hbm %s575_s0, 64 }
   0x2   :  { %p289_p0 = scmp.ne.s32.totalorder %s575_s0, %s288_s11  ;;  %p291_p1 = scmp.lt.u32.totalorder %s290_s16, %s288_s11 }
   0x3   :  { %p292_p2 = scmp.lt.u32.totalorder %s288_s11, %s575_s0 }
   0x5   :  { %p293_p3 = por %p292_p2, %p291_p1 }
   0x7   :  { %p294_p4 = pnand %p293_p3, %p289_p0 }
   0x9   :  { %297 = shalt.err (!%p294_p4)  }
   0xa   :  { %s404_s19 = smov [#allocation3]  }
   0xb   :  { %8 = dma.hbm_to_smem %s575_s0, 48, %s404_s19, [#allocation2] }
   0xc   :  { %374 = dma.done.wait [#allocation2], 48 }
   0xd   :  { %375 = vsyncadd [#allocation2], 4294967248 }
   0xe   :  { %10 = sfence }
   0xf   :  { %11 = vsyncpa [#allocation5], 0 }
  0x10   :  { %12 = vsyncpa [#allocation6], 0 }
  0x11   :  { %14 = vsyncpa [#allocation6 + $0x1], 0  ;;  %s441_s22 = smov 0   ;;  %s443_s23 = smov 0  }
  0x12   :  { %s445_s24 = smov 0   ;;  %s447_s25 = smov 0  }
  0x13 LB: > { %s462_s0 = sadd.s32 4294967295, %s398_s25   ;;  %s212_s26 = sadd.s32 4294967294, %s398_s25   ;;  %s398_s25 = sphi %s447_s25, %s593_s25   ;;  %s394_s24 = sphi %s445_s24, %s592_s24   ;;  %s390_s23 = sphi %s443_s23, %s591_s23   ;;  %s386_s22 = sphi %s441_s22, %s590_s22  }
  0x14   : > { %s466_s27 = sadd.s32 1, %s398_s25   ;;  %s48_s28 = sadd.s32 1, %s394_s24 }
  0x15   : > { %s45_s29 = ssub.s32 %s398_s25, %s466_s27  ;;  %p58_p5 = scmp.ne.s32.totalorder %s394_s24, %s390_s23 }
  0x16   : > { %p46_p6 = scmp.eq.s32.totalorder %s45_s29, 0  ;;  %p59_p7 = scmp.eq.s32.totalorder %s462_s0, 2 }
  0x17   : > { %p64_p8 = scmp.ne.s32.totalorder %s390_s23, %s386_s22  ;;  %p65_p9 = scmp.eq.s32.totalorder %s212_s26, 2 }
  0x18   : > { %s477_s30 = scalar_select %p46_p6, %s394_s24, %s48_s28  }
  0x19   : > { %p479_p10 = por %p59_p7, %p58_p5  ;;  %p483_p11 = por %p65_p9, %p64_p8 }
  0x1a   : > { %p213_p12 = scmp.ge.s32.totalorder %s398_s25, 1  ;;  %p72_p13 = scmp.lt.s32.totalorder %s398_s25, 4 }
  0x1b   : > { %s581_s3 = scalar_select %p479_p10, 1, 0 }
  0x1c   : > { %s582_s4 = scalar_select %p483_p11, 1, 0 }
  0x1d   : > { %p578_p0 = scmp.eq.s32.totalorder %s462_s0, 0  ;;  %p490_p1 = pnand %p213_p12, %p72_p13 }
  0x1e   : > { %s405_s6 = smov [#allocation4]   ;;  %s298_s11 = scalar_lea.hbm %s576_s1, 8192 }
  0x1f   : > { %s583_s5 = scalar_select %p490_p1, 1, 0 }
  0x20   : > { %s84_s7 = sshll.u32 %s405_s6, 4  ;;  %p231_p2 = pneg %p490_p1  ;;  %s85_s7 = int_to_ptr.vmem [resolvable:$true] %s84_s7 }
  0x21   : > { %p299_p4 = scmp.ne.s32.totalorder %s576_s1, %s298_s11  ;;  %p305_p8 = scmp.lt.u32.totalorder %s298_s11, %s576_s1 }
  0x22   : > { %p498_p3 = pnand %p578_p0, %p231_p2 }
  0x24   : > { %p300_p5 = pneg %p498_p3 }
  0x26   : > { %p301_p6 = pnand %p300_p5, %p299_p4 }
  0x28   : > { %p302_p7 = pneg %p301_p6 }
  0x2a   : > { %p307_p9 = pnand %p305_p8, %p302_p7 }
  0x2c   : > { %310 = shalt.err (!%p307_p9)
}
  0x2d   : > { %s311_s16 = scalar_lea.vmem %s85_s7, 8192  ;;  %p319_p0 = scmp.lt.s32.totalorder %s85_s7, %s85_s7 }
  0x2e   : > { %p312_p12 = scmp.ne.s32.totalorder %s85_s7, %s311_s16  ;;  %p320_p11 = scmp.lt.s32.totalorder %s311_s16, %s311_s16 }
  0x30   : > { %p314_p13 = pnand %p312_p12, %p300_p5  ;;  %p321_p10 = por %p320_p11, %p319_p0 }
  0x32   : > { %p315_p2 = pneg %p314_p13 }
  0x34   : > { %p322_p1 = pnand %p321_p10, %p315_p2 }
  0x36   : > { %325 = shalt.err (!%p322_p1)
}
  0x37   : > { %s406_s17 = smov 128   ;;  %s407_s18 = smov 8  }
  0x38   : > { %234 = dma.hbm_to_vmem [thread:$0]  (!%p498_p3), %s576_s1, 8192, %s85_s7, [#allocation5], %s406_s17, %s406_s17, %s407_s18  }
  0x39   : > { %p585_p4 = scmp.ne.s32.totalorder %s583_s5, 0 }
  0x3a   : > { %p586_p6 = scmp.eq.s32.totalorder (!%p585_p4), %s462_s0, 0 }
  0x3b   : > { %100 = sbr.rel (%p585_p4) target bundleno = 100 (0x64), region = 24 }
  0x42   : > { %377 = dma.done.wait (%p586_p6), [#allocation5], 8192   ;;  %p587_p5 = pmov %p586_p6 }
  0x43   : > { %s112_s21 = sand.u32 1, %s390_s23   ;;  %s218_s26 = sshll.u32 %s462_s0, 7 }
  0x44   : > { %379 = vsyncadd (%p587_p5), [#allocation5], 4294959104  ;;  %s217_s28 = sshll.u32 %s112_s21, 7  ;;  %s400_s6 = smov 0  }
  0x45   : > { %s114_s29 = scalar_lea.vmem [#allocation7], %s217_s28 }
  0x46 LB: >> { %s123_s7 = sadd.s32 %s402_s6, %s218_s26  ;;  %s127_s5 = scalar_lea.vmem %s114_s29, %s402_s6 [#allocation7]  ;;  %s402_s6 = sphi %s400_s6, %s122_s6  }
  0x47   : >> { %s124_s8 = sld [smem:[#allocation3 + %s123_s7]]  ;;  %s122_s6 = sadd.s32 1, %s402_s6  }
  0x48   : >> { %p119_p10 = scmp.ge.s32.totalorder %s122_s6, 128  }
  0x49   : > { %s224_s10 = sshll.u32 (%p119_p10), %s462_s0, 11  ;;  %s143_s14 = sshll.u32 (%p119_p10), %s114_s29, 4  ;;  %s532_s14 = int_to_ptr.vmem [resolvable:$true] %s143_s14 }
  0x4a   : > { %121 = sbr.rel (!%p119_p10) target bundleno = 70 (0x46), region = 70  ;;  %s530_s13 = scalar_lea.hbm (%p119_p10), %s577_s2, %s224_s10 }
  0x4b   : > { %s534_s15 = scalar_lea.sflag (%p119_p10), [#allocation6], %s112_s21  ;;  %s326_s16 = scalar_lea.vmem (%p119_p10), %s532_s14, 2048 }
  0x4c   : > { %p327_p11 = scmp.ne.s32.totalorder (%p119_p10), %s532_s14, %s326_s16  ;;  %p588_p0 = scmp.ne.s32.totalorder (%p119_p10), %s581_s3, 0 }
  0x4d   : >> { %s125_s9 = scalar_lea.vmem [#allocation4], %s124_s8  ;;  %s408_s17 = smov (%p119_p10), [#allocation7]  }
  0x4e   : >> { %v126_v0 = vld [vmem:[%s125_s9] sm:$0x1]  ;;  %p328_p1 = pnand (%p119_p10), %p327_p11, %p588_p0  ;;  %s330_s0 = sshll.u32 (%p119_p10), %s408_s17, 4  ;;  %s331_s0 = int_to_ptr.vmem [resolvable:$false] %s330_s0 }
  0x4f   : >> { %128 = vst [vmem:[%s127_s5] sm:$0x1] %v126_v0  ;;  %s332_s18 = scalar_lea.vmem (%p119_p10), %s331_s0, 4096  ;;  %p333_p7 = scmp.lt.s32.totalorder (%p119_p10), %s532_s14, %s331_s0 }
  0x50   : > { %p329_p3 = pneg (%p119_p10), %p328_p1  ;;  %p334_p8 = scmp.lt.s32.totalorder (%p119_p10), %s332_s18, %s326_s16 }
  0x52   : > { %p335_p9 = por %p334_p8, %p333_p7 }
  0x54   : > { %p336_p12 = pnand %p335_p9, %p329_p3 }
  0x56   : > { %339 = shalt.err (!%p336_p12)
}
  0x57   : > { %s340_s19 = scalar_lea.hbm %s530_s13, 2048  ;;  %s344_s26 = scalar_lea.hbm %s577_s2, 6144 }
  0x58   : > { %p341_p13 = scmp.ne.s32.totalorder %s530_s13, %s340_s19  ;;  %p345_p6 = scmp.lt.u32.totalorder %s530_s13, %s577_s2 }
  0x59   : > { %p346_p5 = scmp.lt.u32.totalorder %s344_s26, %s340_s19  ;;  %p348_p11 = scmp.lt.u32.totalorder %s340_s19, %s530_s13 }
  0x5a   : > { %p342_p2 = pnand %p341_p13, %p588_p0 }
  0x5b   : > { %p347_p10 = por %p346_p5, %p345_p6 }
  0x5c   : > { %p343_p4 = pneg %p342_p2 }
  0x5d   : > { %p349_p1 = por %p348_p11, %p347_p10 }
  0x5f   : > { %p350_p3 = pnand %p349_p1, %p343_p4 }
  0x61   : > { %353 = shalt.err (!%p350_p3)
}
  0x62   : > { %s409_s6 = smov 128   ;;  %s410_s7 = smov 8  }
  0x63   : > { %229 = dma.vmem_to_hbm [thread:$0]  (%p588_p0), %s532_s14, 2048, %s530_s13, %s534_s15, %s409_s6, %s409_s6, %s410_s7  }
  0x64 PF: > { %p241_p7 = scmp.ge.s32.totalorder %s398_s25, 2  ;;  %s158_s8 = sand.u32 1, %s386_s22  }
  0x65   : > { %p589_p8 = scmp.ne.s32.totalorder %s582_s4, 0  ;;  %s159_s5 = scalar_lea.sflag [#allocation6], %s158_s8 }
  0x67   : > { %p236_p9 = pnand %p241_p7, %p589_p8 }
  0x69   : > { %381 = dma.done.wait (!%p236_p9), %s159_s5, 2048  }
  0x6a   : > { %383 = vsyncadd (!%p236_p9), %s159_s5, 4294965248  ;;  %p17_p12 = scmp.ge.s32.totalorder %s466_s27, 5   ;;  %s590_s22 = smov %s390_s23 }
  0x6b   : > { %s591_s23 = smov %s394_s24  ;;  %s592_s24 = smov %s477_s30 }
  0x6c   : > { %s593_s25 = smov %s466_s27  ;;  %19 = sbr.rel (!%p17_p12) target bundleno = 19 (0x13), region = 81 }
  0x73   :  { %164 = vsyncpa [#allocation5], 1 }
  0x74   :  { %166 = vsyncpa [#allocation5 + $0x1], 1 }
  0x75   :  { %167 = vsyncpa [#allocation6], 1 }
  0x76   :  { %169 = vsyncpa [#allocation6 + $0x1], 1 }

</bundles_post_ra>
